<compile_context>
chip_gen: v7x
topology: tpu7x:2x2x1
jax: 0.10.0
libtpu: 0.0.40
codegen_flags: <defaults>
</compile_context>

<pallas_src>
import jax
import jax.numpy as jnp
from jax.experimental import pallas as pl
from jax.experimental.pallas import tpu as pltpu

TB = 2048       # max batch-tile rows per grid step
_SUBLANE = 16   # bf16 sublane packing; keep batch tiles a multiple of this


def _round_up(n, m):
    return ((n + m - 1) // m) * m


def _mlp_kernel(x_ref, w1_ref, b1_ref, w2_ref, b2_ref, w3_ref, b3_ref, o_ref):
    # x and weights arrive as bf16 (MXU-friendly); accumulation is f32.
    x = x_ref[...]

    h1 = jnp.dot(x, w1_ref[...], preferred_element_type=jnp.float32) + b1_ref[...]
    h1 = jnp.maximum(h1, 0.0)                                   # ReLU in f32

    h2 = jnp.dot(h1.astype(jnp.bfloat16), w2_ref[...],
                 preferred_element_type=jnp.float32) + b2_ref[...]
    h2 = jnp.maximum(h2, 0.0)                                   # ReLU in f32

    logits = jnp.dot(h2.astype(jnp.bfloat16), w3_ref[...],
                     preferred_element_type=jnp.float32) + b3_ref[...]
    o_ref[...] = logits.astype(o_ref.dtype)                     # (tb, out_dim) f32 store


def sigmoid_mlp_forward(x, params, *, tb_max=TB):
    """SigmoidMLP forward. x: [B, input_dim] float32. Returns logits.squeeze()."""
    w1, b1, w2, b2, w3, b3 = params
    B, in_dim = x.shape
    h1_dim = w1.shape[1]
    h2_dim = w2.shape[1]
    out_dim = w3.shape[1]

    # ---- batch tile: clamp for small B, aim for >=2 grid steps when possible ----
    tb = min(tb_max, _round_up(max(pl.cdiv(B, 2), 1), _SUBLANE))
    nb = pl.cdiv(B, tb)
    b_pad = nb * tb
    if b_pad != B:
        x = jnp.pad(x, ((0, b_pad - B), (0, 0)))

    # ---- bf16 operands for the MXU; f32 biases for the epilogue ----
    x_bf = x.astype(jnp.bfloat16)
    w1_bf = w1.astype(jnp.bfloat16)
    w2_bf = w2.astype(jnp.bfloat16)
    w3_bf = w3.astype(jnp.bfloat16)
    b1_f = b1.astype(jnp.float32)
    b2_f = b2.astype(jnp.float32)
    b3_f = b3.astype(jnp.float32)

    flops = 2 * b_pad * (in_dim * h1_dim + h1_dim * h2_dim + h2_dim * out_dim)
    bytes_accessed = (x_bf.size * 2
                      + (w1_bf.size + w2_bf.size + w3_bf.size) * 2
                      + (b1_f.size + b2_f.size + b3_f.size) * 4
                      + b_pad * out_dim * 4)

    def resident(arr):
        # Constant block index across the batch grid => DMA'd once, stays in VMEM.
        return pl.BlockSpec(arr.shape, lambda i: (0,) * arr.ndim)

    logits = pl.pallas_call(
        _mlp_kernel,
        out_shape=jax.ShapeDtypeStruct((b_pad, out_dim), jnp.float32),
        grid_spec=pltpu.PrefetchScalarGridSpec(
            num_scalar_prefetch=0,
            grid=(nb,),
            in_specs=[
                pl.BlockSpec((tb, in_dim), lambda i: (i, 0)),
                resident(w1_bf), resident(b1_f),
                resident(w2_bf), resident(b2_f),
                resident(w3_bf), resident(b3_f),
            ],
            # Last dim == full array dim (out_dim), so the (8,128) rule is satisfied
            # without any lane padding; no extra HBM writeback.
            out_specs=pl.BlockSpec((tb, out_dim), lambda i: (i, 0)),
        ),
        compiler_params=pltpu.CompilerParams(
            dimension_semantics=("parallel",),   # 2 TCs on v7x; no-op on v5e/v6e
        ),
        cost_estimate=pl.CostEstimate(
            flops=flops, transcendentals=0, bytes_accessed=bytes_accessed),
    )(x_bf, w1_bf, b1_f, w2_bf, b2_f, w3_bf, b3_f)

    # Strip batch padding, then torch-style .squeeze().
    logits = logits[:B]
    return jnp.squeeze(logits)


def init_params(key, input_dim=8, output_dim=8, hidden_sizes=(128, 128)):
    """Deterministic synthetic parameters, stored as [in, out] (= torch W.T)."""
    dims = [input_dim, *hidden_sizes, output_dim]
    params = []
    for i in range(len(dims) - 1):
        key, kw, kb = jax.random.split(key, 3)
        fan_in, fan_out = dims[i], dims[i + 1]
        bound = 1.0 / jnp.sqrt(fan_in)
        w = jax.random.uniform(kw, (fan_in, fan_out), jnp.float32, -bound, bound)
        # biases kept 2D (1, out) for clean TPU lane layout; broadcasts over batch.
        b = jax.random.uniform(kb, (1, fan_out), jnp.float32, -bound, bound)
        params.extend([w, b])
    return params


if __name__ == "__main__":
    key = jax.random.PRNGKey(0)
    k_x, k_p = jax.random.split(key)

    batch, input_dim, output_dim = 8, 8, 8
    x = jax.random.normal(k_x, (batch, input_dim), jnp.float32)
    params = init_params(k_p, input_dim=input_dim, output_dim=output_dim,
                         hidden_sizes=(128, 128))

    out = sigmoid_mlp_forward(x, params)
    jax.block_until_ready(out)

    # Reference with the same numerics (bf16 operands, f32 accumulation).
    w1, b1, w2, b2, w3, b3 = params
    xb = x.astype(jnp.bfloat16)
    h1 = jnp.maximum(jnp.dot(xb, w1.astype(jnp.bfloat16),
                             preferred_element_type=jnp.float32) + b1, 0.0)
    h2 = jnp.maximum(jnp.dot(h1.astype(jnp.bfloat16), w2.astype(jnp.bfloat16),
                             preferred_element_type=jnp.float32) + b2, 0.0)
    ref = jnp.squeeze(jnp.dot(h2.astype(jnp.bfloat16), w3.astype(jnp.bfloat16),
                              preferred_element_type=jnp.float32) + b3)

    assert out.shape == ref.shape, (out.shape, ref.shape)
    assert jnp.allclose(out, ref, atol=5e-3, rtol=5e-3), float(jnp.max(jnp.abs(out - ref)))

    print("KERNEL_OK")
</pallas_src>

<mosaic_0001>
module attributes {stable_mosaic.version = 11 : i64} {
  func.func @_mlp_kernel(%arg0: i32, %arg1: memref<16x8xbf16, #tpu.memory_space<vmem>>, %arg2: memref<8x128xbf16, #tpu.memory_space<vmem>>, %arg3: memref<1x128xf32, #tpu.memory_space<vmem>>, %arg4: memref<128x128xbf16, #tpu.memory_space<vmem>>, %arg5: memref<1x128xf32, #tpu.memory_space<vmem>>, %arg6: memref<128x8xbf16, #tpu.memory_space<vmem>>, %arg7: memref<1x8xf32, #tpu.memory_space<vmem>>, %arg8: memref<16x8xf32, #tpu.memory_space<vmem>>) attributes {dimension_semantics = [#tpu.dimension_semantics<parallel>], iteration_bounds = array<i64: 1>, scalar_prefetch = 0 : i64, scratch_operands = 0 : i64, tpu.core_type = #tpu.core_type<tc>, window_params = [{transform_indices = @transform_0, window_bounds = array<i64: 16, 8>}, {pipeline_mode = #tpu.pipeline_mode<synchronous>, transform_indices = @transform_1, window_bounds = array<i64: 8, 128>}, {pipeline_mode = #tpu.pipeline_mode<synchronous>, transform_indices = @transform_2, window_bounds = array<i64: 1, 128>}, {pipeline_mode = #tpu.pipeline_mode<synchronous>, transform_indices = @transform_3, window_bounds = array<i64: 128, 128>}, {pipeline_mode = #tpu.pipeline_mode<synchronous>, transform_indices = @transform_4, window_bounds = array<i64: 1, 128>}, {pipeline_mode = #tpu.pipeline_mode<synchronous>, transform_indices = @transform_5, window_bounds = array<i64: 128, 8>}, {pipeline_mode = #tpu.pipeline_mode<synchronous>, transform_indices = @transform_6, window_bounds = array<i64: 1, 8>}, {transform_indices = @transform_7, window_bounds = array<i64: 16, 8>}]} {
    %c0 = arith.constant 0 : index
    %c0_0 = arith.constant 0 : index
    %0 = vector.load %arg1[%c0, %c0_0] : memref<16x8xbf16, #tpu.memory_space<vmem>>, vector<16x8xbf16>
    %c0_1 = arith.constant 0 : index
    %c0_2 = arith.constant 0 : index
    %1 = vector.load %arg2[%c0_1, %c0_2] : memref<8x128xbf16, #tpu.memory_space<vmem>>, vector<8x128xbf16>
    %cst = arith.constant dense<0.000000e+00> : vector<16x128xf32>
    %2 = tpu.matmul %0, %1, %cst {dimension_numbers = #tpu.dot_dimension_numbers<[1], [0], [0], [1], [0, 0, 1, 1], [], []>} : vector<16x8xbf16>, vector<8x128xbf16>, vector<16x128xf32> -> vector<16x128xf32>
    %c0_3 = arith.constant 0 : index
    %c0_4 = arith.constant 0 : index
    %3 = vector.load %arg3[%c0_3, %c0_4] : memref<1x128xf32, #tpu.memory_space<vmem>>, vector<1x128xf32>
    %4 = vector.broadcast %3 : vector<1x128xf32> to vector<16x128xf32>
    %5 = arith.addf %2, %4 : vector<16x128xf32>
    %cst_5 = arith.constant 0.000000e+00 : f32
    %6 = vector.broadcast %cst_5 : f32 to vector<16x128xf32>
    %7 = arith.maximumf %5, %6 : vector<16x128xf32>
    %8 = arith.truncf %7 : vector<16x128xf32> to vector<16x128xbf16>
    %c0_6 = arith.constant 0 : index
    %c0_7 = arith.constant 0 : index
    %9 = vector.load %arg4[%c0_6, %c0_7] : memref<128x128xbf16, #tpu.memory_space<vmem>>, vector<128x128xbf16>
    %cst_8 = arith.constant dense<0.000000e+00> : vector<16x128xf32>
    %10 = tpu.matmul %8, %9, %cst_8 {dimension_numbers = #tpu.dot_dimension_numbers<[1], [0], [0], [1], [0, 0, 1, 1], [], []>} : vector<16x128xbf16>, vector<128x128xbf16>, vector<16x128xf32> -> vector<16x128xf32>
    %c0_9 = arith.constant 0 : index
    %c0_10 = arith.constant 0 : index
    %11 = vector.load %arg5[%c0_9, %c0_10] : memref<1x128xf32, #tpu.memory_space<vmem>>, vector<1x128xf32>
    %12 = vector.broadcast %11 : vector<1x128xf32> to vector<16x128xf32>
    %13 = arith.addf %10, %12 : vector<16x128xf32>
    %cst_11 = arith.constant 0.000000e+00 : f32
    %14 = vector.broadcast %cst_11 : f32 to vector<16x128xf32>
    %15 = arith.maximumf %13, %14 : vector<16x128xf32>
    %16 = arith.truncf %15 : vector<16x128xf32> to vector<16x128xbf16>
    %c0_12 = arith.constant 0 : index
    %c0_13 = arith.constant 0 : index
    %17 = vector.load %arg6[%c0_12, %c0_13] : memref<128x8xbf16, #tpu.memory_space<vmem>>, vector<128x8xbf16>
    %cst_14 = arith.constant dense<0.000000e+00> : vector<16x8xf32>
    %18 = tpu.matmul %16, %17, %cst_14 {dimension_numbers = #tpu.dot_dimension_numbers<[1], [0], [0], [1], [0, 0, 1, 1], [], []>} : vector<16x128xbf16>, vector<128x8xbf16>, vector<16x8xf32> -> vector<16x8xf32>
    %c0_15 = arith.constant 0 : index
    %c0_16 = arith.constant 0 : index
    %19 = vector.load %arg7[%c0_15, %c0_16] : memref<1x8xf32, #tpu.memory_space<vmem>>, vector<1x8xf32>
    %20 = vector.broadcast %19 : vector<1x8xf32> to vector<16x8xf32>
    %21 = arith.addf %18, %20 : vector<16x8xf32>
    %c0_17 = arith.constant 0 : index
    %c0_18 = arith.constant 0 : index
    %22 = vector.load %arg8[%c0_17, %c0_18] : memref<16x8xf32, #tpu.memory_space<vmem>>, vector<16x8xf32>
    tpu.vector_store %arg8[%c0_17, %c0_18], %21 {strides = array<i32>} : memref<16x8xf32, #tpu.memory_space<vmem>>, vector<16x8xf32>,
    return
  }
  func.func @transform_0(%arg0: i32) -> (i32, i32) {
    %c0_i32 = arith.constant 0 : i32
    %c0_i32_0 = arith.constant 0 : i32
    return %arg0, %c0_i32 : i32, i32
  }
  func.func @transform_1(%arg0: i32) -> (i32, i32) {
    %c0_i32 = arith.constant 0 : i32
    %c0_i32_0 = arith.constant 0 : i32
    %c0_i32_1 = arith.constant 0 : i32
    return %c0_i32, %c0_i32_0 : i32, i32
  }
  func.func @transform_2(%arg0: i32) -> (i32, i32) {
    %c0_i32 = arith.constant 0 : i32
    %c0_i32_0 = arith.constant 0 : i32
    %c0_i32_1 = arith.constant 0 : i32
    return %c0_i32, %c0_i32_0 : i32, i32
  }
  func.func @transform_3(%arg0: i32) -> (i32, i32) {
    %c0_i32 = arith.constant 0 : i32
    %c0_i32_0 = arith.constant 0 : i32
    %c0_i32_1 = arith.constant 0 : i32
    return %c0_i32, %c0_i32_0 : i32, i32
  }
  func.func @transform_4(%arg0: i32) -> (i32, i32) {
    %c0_i32 = arith.constant 0 : i32
    %c0_i32_0 = arith.constant 0 : i32
    %c0_i32_1 = arith.constant 0 : i32
    return %c0_i32, %c0_i32_0 : i32, i32
  }
  func.func @transform_5(%arg0: i32) -> (i32, i32) {
    %c0_i32 = arith.constant 0 : i32
    %c0_i32_0 = arith.constant 0 : i32
    %c0_i32_1 = arith.constant 0 : i32
    return %c0_i32, %c0_i32_0 : i32, i32
  }
  func.func @transform_6(%arg0: i32) -> (i32, i32) {
    %c0_i32 = arith.constant 0 : i32
    %c0_i32_0 = arith.constant 0 : i32
    %c0_i32_1 = arith.constant 0 : i32
    return %c0_i32, %c0_i32_0 : i32, i32
  }
  func.func @transform_7(%arg0: i32) -> (i32, i32) {
    %c0_i32 = arith.constant 0 : i32
    %c0_i32_0 = arith.constant 0 : i32
    return %arg0, %c0_i32 : i32, i32
  }
}

</mosaic_0001>

<bundles_post_ra>
// kernel: tpu_custom_call.1
= control target key start
LH: loop header
LB: loop body
LE: loop exit
PB: predicated region body
PF: predicated region fallthrough
CT: control target
= control target key end

     0   :  { %vm46_vm0 = vcmask 1043456   ;;  %v433_v0 = vmov 0.0   ;;  %vm434_vm1 = vmmov 0   ;;  %vm42_vm2 = vcmask 64512   ;;  %s567_s1 = inlined_call_operand.vmem [shape: bf16[8,128], index: 1, kind: input, shape index: {}]   ;;  %s568_s0 = inlined_call_operand.vmem [shape: bf16[16,8], index: 0, kind: input, shape index: {}]   ;;  %s569_s3 = inlined_call_operand.vmem [shape: bf16[128,128], index: 3, kind: input, shape index: {}]   ;;  %s570_s5 = inlined_call_operand.vmem [shape: bf16[128,8], index: 5, kind: input, shape index: {}]   ;;  %s571_s2 = inlined_call_operand.vmem [shape: f32[1,128], index: 2, kind: input, shape index: {}]   ;;  %s572_s4 = inlined_call_operand.vmem [shape: f32[1,128], index: 4, kind: input, shape index: {}]   ;;  %s573_s6 = inlined_call_operand.vmem [shape: f32[1,8], index: 6, kind: input, shape index: {}]   ;;  %s574_s7 = inlined_call_operand.vmem [shape: f32[16,8], index: 7, kind: output, shape index: {}]  }
   0x1   :  { %368 = vmatprep.subr.bf16.mxu0 %v433_v0  ;;  %v29_v1 = vld [vmem:[%s567_s1] sm:$0xf]  ;;  %370 = vmatprep.mubr.msk.bf16.mxu0 %vm434_vm1, %v433_v0  ;;  %v418_v5 = vld [vmem:[%s569_s3 + $0x8] sm:$0xff]   ;;  %v419_v6 = vld [vmem:[%s569_s3 + $0x10] sm:$0xff]  }
   0x2   :  { %v48_v2 = vsel %vm46_vm0, %v29_v1, 0  ;;  %v416_v3 = vld [vmem:[%s568_s0] sm:$0xff]   ;;  %374 = vmatprep.subr.bf16.mxu1 %v433_v0  ;;  %390 = vmatprep.mubr.msk.bf16.mxu1 %vm434_vm1, %v433_v0  ;;  %v420_v7 = vld [vmem:[%s569_s3 + $0x18] sm:$0xff]   ;;  %v422_v9 = vld [vmem:[%s569_s3 + $0x28] sm:$0xff]  }
   0x3   :  { %369 = vmatpush3.bf16.msra.mxu0 %v48_v2  ;;  %v417_v4 = vld [vmem:[%s569_s3] sm:$0xff]   ;;  %v423_v10 = vld [vmem:[%s569_s3 + $0x30] sm:$0xff]   ;;  %v424_v11 = vld [vmem:[%s569_s3 + $0x38] sm:$0xff]  }
   0x4   :  { %394 = vmatprep.subr.bf16.mxu0 %v433_v0  ;;  %375 = vmatpush3.bf16.msra.mxu1 %v417_v4  ;;  %v421_v8 = vld [vmem:[%s569_s3 + $0x20] sm:$0xff]   ;;  %v426_v13 = vld [vmem:[%s570_s5 + $0x8] sm:$0xff]   ;;  %v427_v14 = vld [vmem:[%s570_s5 + $0x10] sm:$0xff]  }
   0x5   :  { %376 = vmatprep.subr.bf16.mxu1 %v433_v0  ;;  %v425_v12 = vld [vmem:[%s570_s5] sm:$0xff]   ;;  %v428_v15 = vld [vmem:[%s570_s5 + $0x18] sm:$0xff]   ;;  %v430_v17 = vld [vmem:[%s570_s5 + $0x28] sm:$0xff]  }
   0x6   :  { %371 = vmatmul.mubr.msk.bf16.vlgmr.msra.gmra.mrb[0].mxu0 %vm42_vm2, %v416_v3  ;;  %v429_v16 = vld [vmem:[%s570_s5 + $0x20] sm:$0xff]   ;;  %v431_v28 = vld [vmem:[%s570_s5 + $0x30] sm:$0xff]   ;;  %v432_v29 = vld [vmem:[%s570_s5 + $0x38] sm:$0xff]  }
   0x7   :  { %410 = vmatprep.mubr.msk.bf16.mxu0 %vm434_vm1, %v433_v0  ;;  %395 = vmatpush3.bf16.msra.mxu0 %v425_v12  ;;  %v327_v18 = vld [vmem:[%s571_s2] ss:$0 sm:$0xff] }
   0x8   :  { %377 = vmatpush3.bf16.msra.mxu1 %v418_v5  ;;  %396 = vmatprep.subr.bf16.mxu0 %v433_v0  ;;  %v330_v30 = vld [vmem:[%s572_s4] ss:$0 sm:$0xff] }
   0x9   :  { %378 = vmatprep.subr.bf16.mxu1 %v433_v0  ;;  %v339_v40 = vld [vmem:[%s573_s6] ss:$0 sm:$0xff] }
   0xb   :  { %397 = vmatpush3.bf16.msra.mxu0 %v426_v13 }
   0xc   :  { %379 = vmatpush3.bf16.msra.mxu1 %v419_v6  ;;  %398 = vmatprep.subr.bf16.mxu0 %v433_v0 }
   0xd   :  { %380 = vmatprep.subr.bf16.mxu1 %v433_v0 }
   0xf   :  { %399 = vmatpush3.bf16.msra.mxu0 %v427_v14 }
  0x10   :  { %381 = vmatpush3.bf16.msra.mxu1 %v420_v7  ;;  %400 = vmatprep.subr.bf16.mxu0 %v433_v0 }
  0x11   :  { %382 = vmatprep.subr.bf16.mxu1 %v433_v0 }
  0x13   :  { %401 = vmatpush3.bf16.msra.mxu0 %v428_v15 }
  0x14   :  { %383 = vmatpush3.bf16.msra.mxu1 %v421_v8  ;;  %402 = vmatprep.subr.bf16.mxu0 %v433_v0 }
  0x15   :  { %384 = vmatprep.subr.bf16.mxu1 %v433_v0 }
  0x17   :  { %403 = vmatpush3.bf16.msra.mxu0 %v429_v16 }
  0x18   :  { %385 = vmatpush3.bf16.msra.mxu1 %v422_v9  ;;  %404 = vmatprep.subr.bf16.mxu0 %v433_v0 }
  0x19   :  { %386 = vmatprep.subr.bf16.mxu1 %v433_v0 }
  0x1b   :  { %405 = vmatpush3.bf16.msra.mxu0 %v430_v17 }
  0x1c   :  { %387 = vmatpush3.bf16.msra.mxu1 %v423_v10  ;;  %406 = vmatprep.subr.bf16.mxu0 %v433_v0 }
  0x1d   :  { %388 = vmatprep.subr.bf16.mxu1 %v433_v0 }
  0x1f   :  { %407 = vmatpush3.bf16.msra.mxu0 %v431_v28 }
  0x20   :  { %389 = vmatpush3.bf16.msra.mxu1 %v424_v11  ;;  %408 = vmatprep.subr.bf16.mxu0 %v433_v0 }
  0x23   :  { %409 = vmatpush3.bf16.msra.mxu0 %v432_v29 }
  0xd9   :  { %v84_v19 = vpop.f32.mrb[0].mxu0 }
  0xda   :  { %v85_v20 = vadd.f32 %v327_v18, %v84_v19  ;;  %v372_v21 = vpop.f32.mrb[1].mxu0 }
  0xdb   :  { %v87_v22 = vpop.f32.mrb[2].mxu0 }
  0xdc   :  { %v88_v23 = vadd.f32 %v327_v18, %v87_v22  ;;  %v373_v24 = vpop.f32.mrb[3].mxu0  ;;  %v91_v25 = vmax.f32 %v85_v20, 0.0 }
  0xde   :  { %v92_v26 = vmax.f32 %v88_v23, 0.0 }
  0xe0   :  { %v93_v27 = vpack.c.bf16 %v92_v26, %v91_v25 }
  0xe2   :  { %391 = vmatmul.mubr.bf16.vlgmr.msra.gmra.mrb[0].mxu1 %v93_v27 }
 0x1b5   :  { %v199_v31 = vpop.f32.mrb[0].mxu1 }
 0x1b6   :  { %v200_v32 = vadd.f32 %v330_v30, %v199_v31  ;;  %v392_v33 = vpop.f32.mrb[1].mxu1 }
 0x1b7   :  { %v202_v34 = vpop.f32.mrb[2].mxu1 }
 0x1b8   :  { %v203_v35 = vadd.f32 %v330_v30, %v202_v34  ;;  %v393_v36 = vpop.f32.mrb[3].mxu1  ;;  %v206_v37 = vmax.f32 %v200_v32, 0.0 }
 0x1ba   :  { %v207_v38 = vmax.f32 %v203_v35, 0.0 }
 0x1bc   :  { %v208_v39 = vpack.c.bf16 %v207_v38, %v206_v37 }
 0x1be   :  { %411 = vmatmul.mubr.bf16.vlgmr.msra.gmra.mrb[4].mxu0 %v208_v39 }
 0x291   :  { %v314_v41 = vpop.f32.mrb[4].mxu0 }
 0x292   :  { %v315_v42 = vadd.f32 %v339_v40, %v314_v41  ;;  %v412_v43 = vpop.f32.mrb[5].mxu0 }
 0x293   :  { %v317_v44 = vpop.f32.mrb[6].mxu0 }
 0x294   :  { %321 = vst.msk [vmem:[%s574_s7] sm:$0xff] %vm42_vm2, %v315_v42  ;;  %v318_v45 = vadd.f32 %v339_v40, %v317_v44  ;;  %v413_v46 = vpop.f32.mrb[7].mxu0 }
 0x296   :  { %322 = vst.msk [vmem:[%s574_s7 + $0x8] sm:$0xff] %vm42_vm2, %v318_v45 }

</bundles_post_ra>
